<compile_context>
chip_gen: v6e
topology: v6e:2x2x1
jax: 0.10.0
libtpu: 0.0.40
codegen_flags: <defaults>
</compile_context>

<pallas_src>
import functools

import jax
import jax.numpy as jnp
from jax import lax
from jax.experimental import pallas as pl
from jax.experimental.pallas import tpu as pltpu

EPS = 1e-5

IN_F, HID_F, OUT_F = 50, 160, 121      # logical sizes (PyTorch module)
IN_P, HID_P, OUT_P = 128, 256, 128     # lane-dense padded sizes

RESIDENT_MAX_ROWS = 4096               # fused VMEM-resident path threshold
MAX_TILE_B = 2048                      # batch rows per grid step (tiled path)
_VMEM_RESIDENT = 48 * 1024 * 1024      # < v7x 64 MiB physical VMEM
_VMEM_TILED = 32 * 1024 * 1024

# Row layout of the packed (8, HID_P) f32 vector buffer.
ROW_B1, ROW_B2, ROW_B3, ROW_B4, ROW_B5 = 0, 1, 2, 3, 4
ROW_G2, ROW_BE2 = 5, 6


# ----------------------------------------------------------------------------
# Small helpers
# ----------------------------------------------------------------------------
def _round_up(a, m):
    return (a + m - 1) // m * m


def _full_spec(a):
    """Whole 2-D array resident across the grid."""
    return pl.BlockSpec(a.shape, lambda i: (0, 0))


def _finalize_stats(stats_ref, gamma, beta, n_rows):
    """Turn accumulated (sum, sumsq) rows into folded BN (scale, shift) rows."""
    inv_n = 1.0 / n_rows
    s = stats_ref[0:1, :]
    ss = stats_ref[1:2, :]
    mean = s * inv_n
    # Single-pass variance; activations here are post-BN / post-ReLU (O(1)),
    # so cancellation is benign; clamp at 0 as a guard.
    var = jnp.maximum(ss * inv_n - mean * mean, 0.0)
    scale = gamma * lax.rsqrt(var + EPS)
    stats_ref[0:1, :] = scale
    stats_ref[1:2, :] = beta - mean * scale


def _mask_tail(h, tile_start, n_rows):
    """Zero batch-padding rows of the last tile (global row >= n_rows)."""
    row = lax.broadcasted_iota(jnp.int32, h.shape, 0)
    return jnp.where(row < (n_rows - tile_start), h, 0.0)


# ----------------------------------------------------------------------------
# Path A: whole network in one kernel, all activations VMEM-resident.
# ----------------------------------------------------------------------------
def _resident_kernel(x_ref, w1_ref, w2_ref, w3_ref, w4_ref, w5_ref,
                     b1e_ref, vec_ref, o_ref, *, n_rows):
    rows = x_ref.shape[0]
    inv_n = 1.0 / n_rows
    if n_rows == rows:
        mask = None
    else:
        ridx = lax.broadcasted_iota(jnp.int32, (rows, 1), 0)
        mask = (ridx < n_rows).astype(jnp.float32)

    g2 = vec_ref[ROW_G2:ROW_G2 + 1, :]
    be2 = vec_ref[ROW_BE2:ROW_BE2 + 1, :]

    def bn2(h):
        # Full-batch biased stats (training-mode BN), batch-pad rows excluded.
        hm = h if mask is None else h * mask
        m = jnp.sum(hm, axis=0, keepdims=True) * inv_n
        v = jnp.maximum(jnp.sum(hm * hm, axis=0, keepdims=True) * inv_n - m * m,
                        0.0)
        sc = g2 * lax.rsqrt(v + EPS)
        return h * sc + (be2 - m * sc)

    # linear1 (bn1 pre-folded into w1/b1 by the wrapper) + relu.
    h = jnp.dot(x_ref[...], w1_ref[...], preferred_element_type=jnp.float32)
    h = jnp.maximum(h + b1e_ref[0:1, :], 0.0)
    # bn2 -> linear2 -> +residual -> relu
    idn = bn2(h)
    h = jnp.dot(idn.astype(jnp.bfloat16), w2_ref[...],
                preferred_element_type=jnp.float32)
    h = jnp.maximum(h + vec_ref[ROW_B2:ROW_B2 + 1, :] + idn, 0.0)
    # bn2 -> linear3 -> +residual -> relu
    idn = bn2(h)
    h = jnp.dot(idn.astype(jnp.bfloat16), w3_ref[...],
                preferred_element_type=jnp.float32)
    h = jnp.maximum(h + vec_ref[ROW_B3:ROW_B3 + 1, :] + idn, 0.0)
    # linear4 -> +residual -> relu
    idn = h
    h = jnp.dot(h.astype(jnp.bfloat16), w4_ref[...],
                preferred_element_type=jnp.float32)
    h = jnp.maximum(h + vec_ref[ROW_B4:ROW_B4 + 1, :] + idn, 0.0)
    # linear5 -> sigmoid (lane-dense 128-wide output; real columns are [:121])
    h = jnp.dot(h.astype(jnp.bfloat16), w5_ref[...],
                preferred_element_type=jnp.float32)
    o_ref[...] = jax.nn.sigmoid(h + vec_ref[ROW_B5:ROW_B5 + 1, :OUT_P])


# ----------------------------------------------------------------------------
# Path B stage 1: (folded bn1 +) linear1 -> relu; bf16 h1 out; bn2 stats.
# ----------------------------------------------------------------------------
def _stage1_kernel(x_ref, w1_ref, b1e_ref, vec_ref, h1_ref, stats_ref, *,
                   n_rows, needs_mask):
    i = pl.program_id(0)
    last = pl.num_programs(0) - 1

    @pl.when(i == 0)
    def _():
        stats_ref[...] = jnp.zeros_like(stats_ref)

    h = jnp.dot(x_ref[...], w1_ref[...], preferred_element_type=jnp.float32)
    h = jnp.maximum(h + b1e_ref[0:1, :], 0.0)

    def emit(hv):
        # Store bf16, but accumulate stats from the f32 value before the cast.
        h1_ref[...] = hv.astype(jnp.bfloat16)
        stats_ref[0:1, :] = stats_ref[0:1, :] + jnp.sum(hv, axis=0,
                                                        keepdims=True)
        stats_ref[1:2, :] = stats_ref[1:2, :] + jnp.sum(hv * hv, axis=0,
                                                        keepdims=True)

    if needs_mask:
        tile_b = h.shape[0]

        @pl.when(i != last)
        def _():
            emit(h)

        @pl.when(i == last)
        def _():
            emit(_mask_tail(h, i * tile_b, n_rows))
    else:
        emit(h)

    @pl.when(i == last)
    def _():
        _finalize_stats(stats_ref, vec_ref[ROW_G2:ROW_G2 + 1, :],
                        vec_ref[ROW_BE2:ROW_BE2 + 1, :], n_rows)


# ----------------------------------------------------------------------------
# Path B stage 2: bn2 -> linear2 -> +residual -> relu; bf16 h2 out; bn2 stats.
# ----------------------------------------------------------------------------
def _stage2_kernel(stats1_ref, h1_ref, w2_ref, vec_ref, h2_ref, stats_ref, *,
                   n_rows, needs_mask):
    i = pl.program_id(0)
    last = pl.num_programs(0) - 1

    @pl.when(i == 0)
    def _():
        stats_ref[...] = jnp.zeros_like(stats_ref)

    # bn2 as a folded (scale, shift) FMA in f32.
    idn = (h1_ref[...].astype(jnp.float32) * stats1_ref[0:1, :]
           + stats1_ref[1:2, :])
    h = jnp.dot(idn.astype(jnp.bfloat16), w2_ref[...],
                preferred_element_type=jnp.float32)
    h = jnp.maximum(h + vec_ref[ROW_B2:ROW_B2 + 1, :] + idn, 0.0)

    def emit(hv):
        h2_ref[...] = hv.astype(jnp.bfloat16)
        stats_ref[0:1, :] = stats_ref[0:1, :] + jnp.sum(hv, axis=0,
                                                        keepdims=True)
        stats_ref[1:2, :] = stats_ref[1:2, :] + jnp.sum(hv * hv, axis=0,
                                                        keepdims=True)

    if needs_mask:
        tile_b = h.shape[0]

        @pl.when(i != last)
        def _():
            emit(h)

        @pl.when(i == last)
        def _():
            emit(_mask_tail(h, i * tile_b, n_rows))
    else:
        emit(h)

    @pl.when(i == last)
    def _():
        _finalize_stats(stats_ref, vec_ref[ROW_G2:ROW_G2 + 1, :],
                        vec_ref[ROW_BE2:ROW_BE2 + 1, :], n_rows)


# ----------------------------------------------------------------------------
# Path B stage 3: bn2 -> block3 -> block4 -> linear5 -> sigmoid (no batch state).
# ----------------------------------------------------------------------------
def _stage3_kernel(stats2_ref, h2_ref, w3_ref, w4_ref, w5_ref, vec_ref, o_ref):
    idn = (h2_ref[...].astype(jnp.float32) * stats2_ref[0:1, :]
           + stats2_ref[1:2, :])
    h = jnp.dot(idn.astype(jnp.bfloat16), w3_ref[...],
                preferred_element_type=jnp.float32)
    h = jnp.maximum(h + vec_ref[ROW_B3:ROW_B3 + 1, :] + idn, 0.0)
    idn = h
    h = jnp.dot(h.astype(jnp.bfloat16), w4_ref[...],
                preferred_element_type=jnp.float32)
    h = jnp.maximum(h + vec_ref[ROW_B4:ROW_B4 + 1, :] + idn, 0.0)
    h = jnp.dot(h.astype(jnp.bfloat16), w5_ref[...],
                preferred_element_type=jnp.float32)
    o_ref[...] = jax.nn.sigmoid(h + vec_ref[ROW_B5:ROW_B5 + 1, :OUT_P])


# ----------------------------------------------------------------------------
# Parameter preparation (done ONCE, outside the per-call forward path).
# ----------------------------------------------------------------------------
def init_params(key):
    """Deterministic init matching the PyTorch layer shapes (not a checkpoint)."""
    dims = [(HID_F, IN_F), (HID_F, HID_F), (HID_F, HID_F), (HID_F, HID_F),
            (OUT_F, HID_F)]
    params = {}
    for i, (out_f, in_f) in enumerate(dims, start=1):
        key, kw, kb = jax.random.split(key, 3)
        bound = 1.0 / jnp.sqrt(in_f)
        params[f"w{i}"] = jax.random.uniform(kw, (out_f, in_f), jnp.float32,
                                             -bound, bound)
        params[f"b{i}"] = jax.random.uniform(kb, (out_f,), jnp.float32,
                                             -bound, bound)
    # Slightly perturbed BN affine params (stronger correctness test than the
    # PyTorch default gamma=1 / beta=0; forward semantics are init-agnostic).
    key, k1, k2, k3, k4 = jax.random.split(key, 5)
    params["g1"] = 1.0 + 0.1 * jax.random.normal(k1, (IN_F,), jnp.float32)
    params["be1"] = 0.1 * jax.random.normal(k2, (IN_F,), jnp.float32)
    params["g2"] = 1.0 + 0.1 * jax.random.normal(k3, (HID_F,), jnp.float32)
    params["be2"] = 0.1 * jax.random.normal(k4, (HID_F,), jnp.float32)
    return params


def prepare_params(params):
    """Transpose to (in, out), zero-pad to lane-dense sizes, cast matmul weights
    to bf16 (w1 stays f32: bn1 is folded into it per call), pack small vectors
    into one (8, 256) f32 buffer."""
    def pad_wT(w, rows, cols, dtype):
        wt = w.T.astype(jnp.float32)
        out = jnp.zeros((rows, cols), jnp.float32)
        out = out.at[: wt.shape[0], : wt.shape[1]].set(wt)
        return out.astype(dtype)

    vec = jnp.zeros((8, HID_P), jnp.float32)
    vec = vec.at[ROW_B1, :HID_F].set(params["b1"])
    vec = vec.at[ROW_B2, :HID_F].set(params["b2"])
    vec = vec.at[ROW_B3, :HID_F].set(params["b3"])
    vec = vec.at[ROW_B4, :HID_F].set(params["b4"])
    vec = vec.at[ROW_B5, :OUT_F].set(params["b5"])
    vec = vec.at[ROW_G2, :HID_F].set(params["g2"])
    vec = vec.at[ROW_BE2, :HID_F].set(params["be2"])

    return {
        "w1T": pad_wT(params["w1"], IN_P, HID_P, jnp.float32),
        "w2": pad_wT(params["w2"], HID_P, HID_P, jnp.bfloat16),
        "w3": pad_wT(params["w3"], HID_P, HID_P, jnp.bfloat16),
        "w4": pad_wT(params["w4"], HID_P, HID_P, jnp.bfloat16),
        "w5": pad_wT(params["w5"], HID_P, OUT_P, jnp.bfloat16),
        "vec": vec,
        "g1": params["g1"].astype(jnp.float32),
        "be1": params["be1"].astype(jnp.float32),
    }


# ----------------------------------------------------------------------------
# Forward wrapper
# ----------------------------------------------------------------------------
@jax.jit
def linresbn_forward(x, prep):
    """x: (B, 50) float array; prep: output of prepare_params()."""
    B = x.shape[0]
    assert x.shape[1] == IN_F
    xf = x.astype(jnp.float32)

    # ---- bn1 computed in XLA (training-mode, biased, TWO-PASS variance) and
    # folded into an effective first-layer weight/bias (no stage-0 kernel).
    mean = jnp.mean(xf, axis=0)
    var = jnp.mean(jnp.square(xf - mean), axis=0)
    scale = prep["g1"] * lax.rsqrt(var + EPS)
    shift = prep["be1"] - mean * scale
    scale_p = jnp.zeros((IN_P,), jnp.float32).at[:IN_F].set(scale)
    shift_p = jnp.zeros((IN_P,), jnp.float32).at[:IN_F].set(shift)
    w1e = (prep["w1T"] * scale_p[:, None]).astype(jnp.bfloat16)      # (128,256)
    b1e = jnp.zeros((8, HID_P), jnp.float32).at[0].set(
        shift_p @ prep["w1T"] + prep["vec"][ROW_B1])                 # row 0 used

    vec = prep["vec"]
    bp8 = _round_up(max(B, 8), 8)

    # ---------------- Path A: everything VMEM-resident (one kernel) --------
    if bp8 <= RESIDENT_MAX_ROWS:
        Bp = bp8
        x_p = jnp.zeros((Bp, IN_P), jnp.bfloat16).at[:B, :IN_F].set(
            x.astype(jnp.bfloat16))
        args = (x_p, w1e, prep["w2"], prep["w3"], prep["w4"], prep["w5"],
                b1e, vec)
        out_p = pl.pallas_call(
            functools.partial(_resident_kernel, n_rows=B),
            grid=(1,),
            in_specs=[_full_spec(a) for a in args],
            out_specs=pl.BlockSpec((Bp, OUT_P), lambda i: (0, 0)),
            out_shape=jax.ShapeDtypeStruct((Bp, OUT_P), jnp.float32),
            compiler_params=pltpu.CompilerParams(
                dimension_semantics=("arbitrary",),
                vmem_limit_bytes=_VMEM_RESIDENT),
        )(*args)
        return out_p[:B, :OUT_F]

    # ---------------- Path B: batch-tiled 3-stage pipeline -----------------
    tile_b = MAX_TILE_B
    Bp = _round_up(B, tile_b)
    nb = Bp // tile_b
    needs_mask = (B != Bp)
    x_p = jnp.zeros((Bp, IN_P), jnp.bfloat16).at[:B, :IN_F].set(
        x.astype(jnp.bfloat16))

    cp_arb = pltpu.CompilerParams(dimension_semantics=("arbitrary",),
                                  vmem_limit_bytes=_VMEM_TILED)
    cp_par = pltpu.CompilerParams(dimension_semantics=("parallel",),
                                  vmem_limit_bytes=_VMEM_TILED)

    # Stage 1: linear1(+folded bn1) -> relu; bf16 h1; bn2 stats of h1.
    h1, stats1 = pl.pallas_call(
        functools.partial(_stage1_kernel, n_rows=B, needs_mask=needs_mask),
        grid=(nb,),
        in_specs=[pl.BlockSpec((tile_b, IN_P), lambda i: (i, 0)),
                  _full_spec(w1e), _full_spec(b1e), _full_spec(vec)],
        out_specs=(pl.BlockSpec((tile_b, HID_P), lambda i: (i, 0)),
                   pl.BlockSpec((8, HID_P), lambda i: (0, 0))),
        out_shape=(jax.ShapeDtypeStruct((Bp, HID_P), jnp.bfloat16),
                   jax.ShapeDtypeStruct((8, HID_P), jnp.float32)),
        compiler_params=cp_arb,
    )(x_p, w1e, b1e, vec)

    # Stage 2: bn2 -> linear2 -> +residual -> relu; bf16 h2; bn2 stats again.
    h2, stats2 = pl.pallas_call(
        functools.partial(_stage2_kernel, n_rows=B, needs_mask=needs_mask),
        grid=(nb,),
        in_specs=[_full_spec(stats1),
                  pl.BlockSpec((tile_b, HID_P), lambda i: (i, 0)),
                  _full_spec(prep["w2"]), _full_spec(vec)],
        out_specs=(pl.BlockSpec((tile_b, HID_P), lambda i: (i, 0)),
                   pl.BlockSpec((8, HID_P), lambda i: (0, 0))),
        out_shape=(jax.ShapeDtypeStruct((Bp, HID_P), jnp.bfloat16),
                   jax.ShapeDtypeStruct((8, HID_P), jnp.float32)),
        compiler_params=cp_arb,
    )(stats1, h1, prep["w2"], vec)

    # Stage 3: bn2 -> block3 -> block4 -> linear5 -> sigmoid (parallel axis).
    out_p = pl.pallas_call(
        _stage3_kernel,
        grid=(nb,),
        in_specs=[_full_spec(stats2),
                  pl.BlockSpec((tile_b, HID_P), lambda i: (i, 0)),
                  _full_spec(prep["w3"]), _full_spec(prep["w4"]),
                  _full_spec(prep["w5"]), _full_spec(vec)],
        out_specs=pl.BlockSpec((tile_b, OUT_P), lambda i: (i, 0)),
        out_shape=jax.ShapeDtypeStruct((Bp, OUT_P), jnp.float32),
        compiler_params=cp_par,
    )(stats2, h2, prep["w3"], prep["w4"], prep["w5"], vec)

    return out_p[:B, :OUT_F]


# ----------------------------------------------------------------------------
# References
# ----------------------------------------------------------------------------
def reference_forward(x, p):
    """Pure-JAX f32 reference mirroring the PyTorch forward (training-mode BN)."""
    def bn(h, g, b):
        m = jnp.mean(h, axis=0, keepdims=True)
        v = jnp.mean((h - m) ** 2, axis=0, keepdims=True)
        return (h - m) / jnp.sqrt(v + EPS) * g + b

    h = bn(x.astype(jnp.float32), p["g1"], p["be1"])
    h = jnp.maximum(h @ p["w1"].T + p["b1"], 0.0)
    h = bn(h, p["g2"], p["be2"])
    idn = h
    h = jnp.maximum(h @ p["w2"].T + p["b2"] + idn, 0.0)
    h = bn(h, p["g2"], p["be2"])
    idn = h
    h = jnp.maximum(h @ p["w3"].T + p["b3"] + idn, 0.0)
    idn = h
    h = jnp.maximum(h @ p["w4"].T + p["b4"] + idn, 0.0)
    return jax.nn.sigmoid(h @ p["w5"].T + p["b5"])


def reference_forward_matched(x, p, bf16_store):
    """Mirrors the kernel arithmetic (folded bn1 into W1, bf16 MXU operands,
    f32 stats; optional bf16 storage of h1/h2 for the tiled path)."""
    xf = x.astype(jnp.float32)
    mean = jnp.mean(xf, axis=0)
    var = jnp.mean(jnp.square(xf - mean), axis=0)
    scale = p["g1"] * lax.rsqrt(var + EPS)
    shift = p["be1"] - mean * scale
    w1e = (p["w1"].T.astype(jnp.float32) * scale[:, None]).astype(jnp.bfloat16)
    b1e = shift @ p["w1"].T + p["b1"]
    inv_n = 1.0 / x.shape[0]

    def mm(a, w):
        return jnp.dot(a.astype(jnp.bfloat16), w.T.astype(jnp.bfloat16),
                       preferred_element_type=jnp.float32)

    def store(h):
        return h.astype(jnp.bfloat16).astype(jnp.float32) if bf16_store else h

    def bn_apply(h_stats, h_apply):
        m = jnp.sum(h_stats, axis=0) * inv_n
        v = jnp.maximum(jnp.sum(h_stats * h_stats, axis=0) * inv_n - m * m, 0.0)
        sc = p["g2"] * lax.rsqrt(v + EPS)
        return h_apply * sc + (p["be2"] - m * sc)

    h = jnp.maximum(jnp.dot(x.astype(jnp.bfloat16), w1e,
                            preferred_element_type=jnp.float32) + b1e, 0.0)
    idn = bn_apply(h, store(h))
    h = jnp.maximum(mm(idn, p["w2"]) + p["b2"] + idn, 0.0)
    idn = bn_apply(h, store(h))
    h = jnp.maximum(mm(idn, p["w3"]) + p["b3"] + idn, 0.0)
    idn = h
    h = jnp.maximum(mm(h, p["w4"]) + p["b4"] + idn, 0.0)
    return jax.nn.sigmoid(mm(h, p["w5"]) + p["b5"])


if __name__ == "__main__":
    key = jax.random.PRNGKey(0)
    key, kp = jax.random.split(key)
    params = init_params(kp)
    prep = prepare_params(params)   # one-time prep (transpose/pad/cast/pack)

    def check(batch, seed, bf16_store):
        xb = jax.random.normal(jax.random.PRNGKey(seed), (batch, IN_F),
                               jnp.float32)
        out = jax.block_until_ready(linresbn_forward(xb, prep))
        assert out.shape == (batch, OUT_F), out.shape
        err_m = float(jnp.max(jnp.abs(out - reference_forward_matched(
            xb, params, bf16_store))))
        err_f = float(jnp.max(jnp.abs(out - reference_forward(xb, params))))
        assert err_m < 1e-2, (batch, err_m)   # structural correctness
        assert err_f < 7e-2, (batch, err_f)   # bf16 rounding budget vs f32 ref

    # Path A (single VMEM-resident kernel), incl. a batch needing row padding.
    check(16, 1, bf16_store=False)
    check(700, 2, bf16_store=False)
    # Path B (batch-tiled 3-stage pipeline, bf16 intermediates): exercises
    # cross-tile stat accumulation and last-tile masking.
    check(5000, 3, bf16_store=True)

    print("KERNEL_OK")
</pallas_src>

<mosaic_0001>
module attributes {stable_mosaic.version = 11 : i64} {
  func.func @_resident_kernel(%arg0: i32, %arg1: memref<16x128xbf16, #tpu.memory_space<vmem>>, %arg2: memref<128x256xbf16, #tpu.memory_space<vmem>>, %arg3: memref<256x256xbf16, #tpu.memory_space<vmem>>, %arg4: memref<256x256xbf16, #tpu.memory_space<vmem>>, %arg5: memref<256x256xbf16, #tpu.memory_space<vmem>>, %arg6: memref<256x128xbf16, #tpu.memory_space<vmem>>, %arg7: memref<8x256xf32, #tpu.memory_space<vmem>>, %arg8: memref<8x256xf32, #tpu.memory_space<vmem>>, %arg9: memref<16x128xf32, #tpu.memory_space<vmem>>) attributes {dimension_semantics = [#tpu.dimension_semantics<arbitrary>], iteration_bounds = array<i64: 1>, scalar_prefetch = 0 : i64, scratch_operands = 0 : i64, tpu.core_type = #tpu.core_type<tc>, window_params = [{pipeline_mode = #tpu.pipeline_mode<synchronous>, transform_indices = @transform_0, window_bounds = array<i64: 16, 128>}, {pipeline_mode = #tpu.pipeline_mode<synchronous>, transform_indices = @transform_1, window_bounds = array<i64: 128, 256>}, {pipeline_mode = #tpu.pipeline_mode<synchronous>, transform_indices = @transform_2, window_bounds = array<i64: 256, 256>}, {pipeline_mode = #tpu.pipeline_mode<synchronous>, transform_indices = @transform_3, window_bounds = array<i64: 256, 256>}, {pipeline_mode = #tpu.pipeline_mode<synchronous>, transform_indices = @transform_4, window_bounds = array<i64: 256, 256>}, {pipeline_mode = #tpu.pipeline_mode<synchronous>, transform_indices = @transform_5, window_bounds = array<i64: 256, 128>}, {pipeline_mode = #tpu.pipeline_mode<synchronous>, transform_indices = @transform_6, window_bounds = array<i64: 8, 256>}, {pipeline_mode = #tpu.pipeline_mode<synchronous>, transform_indices = @transform_7, window_bounds = array<i64: 8, 256>}, {pipeline_mode = #tpu.pipeline_mode<synchronous>, transform_indices = @transform_8, window_bounds = array<i64: 16, 128>}]} {
    %c5 = arith.constant 5 : index
    %c0 = arith.constant 0 : index
    %0 = vector.load %arg8[%c5, %c0] : memref<8x256xf32, #tpu.memory_space<vmem>>, vector<1x256xf32>
    %c6 = arith.constant 6 : index
    %c0_0 = arith.constant 0 : index
    %1 = vector.load %arg8[%c6, %c0_0] : memref<8x256xf32, #tpu.memory_space<vmem>>, vector<1x256xf32>
    %c0_1 = arith.constant 0 : index
    %c0_2 = arith.constant 0 : index
    %2 = vector.load %arg1[%c0_1, %c0_2] : memref<16x128xbf16, #tpu.memory_space<vmem>>, vector<16x128xbf16>
    %c0_3 = arith.constant 0 : index
    %c0_4 = arith.constant 0 : index
    %3 = vector.load %arg2[%c0_3, %c0_4] : memref<128x256xbf16, #tpu.memory_space<vmem>>, vector<128x256xbf16>
    %cst = arith.constant dense<0.000000e+00> : vector<16x256xf32>
    %4 = tpu.matmul %2, %3, %cst {dimension_numbers = #tpu.dot_dimension_numbers<[1], [0], [0], [1], [0, 0, 1, 1], [], []>} : vector<16x128xbf16>, vector<128x256xbf16>, vector<16x256xf32> -> vector<16x256xf32>
    %c0_5 = arith.constant 0 : index
    %c0_6 = arith.constant 0 : index
    %5 = vector.load %arg7[%c0_5, %c0_6] : memref<8x256xf32, #tpu.memory_space<vmem>>, vector<1x256xf32>
    %6 = vector.broadcast %5 : vector<1x256xf32> to vector<16x256xf32>
    %7 = arith.addf %4, %6 : vector<16x256xf32>
    %cst_7 = arith.constant 0.000000e+00 : f32
    %8 = vector.broadcast %cst_7 : f32 to vector<16x256xf32>
    %9 = arith.maximumf %7, %8 : vector<16x256xf32>
    %cst_8 = arith.constant dense<0.000000e+00> : vector<256xf32>
    %10 = vector.multi_reduction <add>, %9, %cst_8 [0] : vector<16x256xf32> to vector<256xf32>
    %11 = vector.shape_cast %10 : vector<256xf32> to vector<1x256xf32>
    %cst_9 = arith.constant 6.250000e-02 : f32
    %12 = vector.broadcast %cst_9 : f32 to vector<1x256xf32>
    %13 = arith.mulf %11, %12 : vector<1x256xf32>
    %14 = arith.mulf %9, %9 : vector<16x256xf32>
    %cst_10 = arith.constant dense<0.000000e+00> : vector<256xf32>
    %15 = vector.multi_reduction <add>, %14, %cst_10 [0] : vector<16x256xf32> to vector<256xf32>
    %16 = vector.shape_cast %15 : vector<256xf32> to vector<1x256xf32>
    %cst_11 = arith.constant 6.250000e-02 : f32
    %17 = vector.broadcast %cst_11 : f32 to vector<1x256xf32>
    %18 = arith.mulf %16, %17 : vector<1x256xf32>
    %19 = arith.mulf %13, %13 : vector<1x256xf32>
    %20 = arith.subf %18, %19 : vector<1x256xf32>
    %cst_12 = arith.constant 0.000000e+00 : f32
    %21 = vector.broadcast %cst_12 : f32 to vector<1x256xf32>
    %22 = arith.maximumf %20, %21 : vector<1x256xf32>
    %cst_13 = arith.constant 9.99999974E-6 : f32
    %23 = vector.broadcast %cst_13 : f32 to vector<1x256xf32>
    %24 = arith.addf %22, %23 : vector<1x256xf32>
    %25 = math.rsqrt %24 : vector<1x256xf32>
    %26 = arith.mulf %0, %25 : vector<1x256xf32>
    %27 = vector.broadcast %26 : vector<1x256xf32> to vector<16x256xf32>
    %28 = arith.mulf %9, %27 : vector<16x256xf32>
    %29 = arith.mulf %13, %26 : vector<1x256xf32>
    %30 = arith.subf %1, %29 : vector<1x256xf32>
    %31 = vector.broadcast %30 : vector<1x256xf32> to vector<16x256xf32>
    %32 = arith.addf %28, %31 : vector<16x256xf32>
    %33 = arith.truncf %32 : vector<16x256xf32> to vector<16x256xbf16>
    %c0_14 = arith.constant 0 : index
    %c0_15 = arith.constant 0 : index
    %34 = vector.load %arg3[%c0_14, %c0_15] : memref<256x256xbf16, #tpu.memory_space<vmem>>, vector<256x256xbf16>
    %cst_16 = arith.constant dense<0.000000e+00> : vector<16x256xf32>
    %35 = tpu.matmul %33, %34, %cst_16 {dimension_numbers = #tpu.dot_dimension_numbers<[1], [0], [0], [1], [0, 0, 1, 1], [], []>} : vector<16x256xbf16>, vector<256x256xbf16>, vector<16x256xf32> -> vector<16x256xf32>
    %c1 = arith.constant 1 : index
    %c0_17 = arith.constant 0 : index
    %36 = vector.load %arg8[%c1, %c0_17] : memref<8x256xf32, #tpu.memory_space<vmem>>, vector<1x256xf32>
    %37 = vector.broadcast %36 : vector<1x256xf32> to vector<16x256xf32>
    %38 = arith.addf %35, %37 : vector<16x256xf32>
    %39 = arith.addf %38, %32 : vector<16x256xf32>
    %cst_18 = arith.constant 0.000000e+00 : f32
    %40 = vector.broadcast %cst_18 : f32 to vector<16x256xf32>
    %41 = arith.maximumf %39, %40 : vector<16x256xf32>
    %cst_19 = arith.constant dense<0.000000e+00> : vector<256xf32>
    %42 = vector.multi_reduction <add>, %41, %cst_19 [0] : vector<16x256xf32> to vector<256xf32>
    %43 = vector.shape_cast %42 : vector<256xf32> to vector<1x256xf32>
    %cst_20 = arith.constant 6.250000e-02 : f32
    %44 = vector.broadcast %cst_20 : f32 to vector<1x256xf32>
    %45 = arith.mulf %43, %44 : vector<1x256xf32>
    %46 = arith.mulf %41, %41 : vector<16x256xf32>
    %cst_21 = arith.constant dense<0.000000e+00> : vector<256xf32>
    %47 = vector.multi_reduction <add>, %46, %cst_21 [0] : vector<16x256xf32> to vector<256xf32>
    %48 = vector.shape_cast %47 : vector<256xf32> to vector<1x256xf32>
    %cst_22 = arith.constant 6.250000e-02 : f32
    %49 = vector.broadcast %cst_22 : f32 to vector<1x256xf32>
    %50 = arith.mulf %48, %49 : vector<1x256xf32>
    %51 = arith.mulf %45, %45 : vector<1x256xf32>
    %52 = arith.subf %50, %51 : vector<1x256xf32>
    %cst_23 = arith.constant 0.000000e+00 : f32
    %53 = vector.broadcast %cst_23 : f32 to vector<1x256xf32>
    %54 = arith.maximumf %52, %53 : vector<1x256xf32>
    %cst_24 = arith.constant 9.99999974E-6 : f32
    %55 = vector.broadcast %cst_24 : f32 to vector<1x256xf32>
    %56 = arith.addf %54, %55 : vector<1x256xf32>
    %57 = math.rsqrt %56 : vector<1x256xf32>
    %58 = arith.mulf %0, %57 : vector<1x256xf32>
    %59 = vector.broadcast %58 : vector<1x256xf32> to vector<16x256xf32>
    %60 = arith.mulf %41, %59 : vector<16x256xf32>
    %61 = arith.mulf %45, %58 : vector<1x256xf32>
    %62 = arith.subf %1, %61 : vector<1x256xf32>
    %63 = vector.broadcast %62 : vector<1x256xf32> to vector<16x256xf32>
    %64 = arith.addf %60, %63 : vector<16x256xf32>
    %65 = arith.truncf %64 : vector<16x256xf32> to vector<16x256xbf16>
    %c0_25 = arith.constant 0 : index
    %c0_26 = arith.constant 0 : index
    %66 = vector.load %arg4[%c0_25, %c0_26] : memref<256x256xbf16, #tpu.memory_space<vmem>>, vector<256x256xbf16>
    %cst_27 = arith.constant dense<0.000000e+00> : vector<16x256xf32>
    %67 = tpu.matmul %65, %66, %cst_27 {dimension_numbers = #tpu.dot_dimension_numbers<[1], [0], [0], [1], [0, 0, 1, 1], [], []>} : vector<16x256xbf16>, vector<256x256xbf16>, vector<16x256xf32> -> vector<16x256xf32>
    %c2 = arith.constant 2 : index
    %c0_28 = arith.constant 0 : index
    %68 = vector.load %arg8[%c2, %c0_28] : memref<8x256xf32, #tpu.memory_space<vmem>>, vector<1x256xf32>
    %69 = vector.broadcast %68 : vector<1x256xf32> to vector<16x256xf32>
    %70 = arith.addf %67, %69 : vector<16x256xf32>
    %71 = arith.addf %70, %64 : vector<16x256xf32>
    %cst_29 = arith.constant 0.000000e+00 : f32
    %72 = vector.broadcast %cst_29 : f32 to vector<16x256xf32>
    %73 = arith.maximumf %71, %72 : vector<16x256xf32>
    %74 = arith.truncf %73 : vector<16x256xf32> to vector<16x256xbf16>
    %c0_30 = arith.constant 0 : index
    %c0_31 = arith.constant 0 : index
    %75 = vector.load %arg5[%c0_30, %c0_31] : memref<256x256xbf16, #tpu.memory_space<vmem>>, vector<256x256xbf16>
    %cst_32 = arith.constant dense<0.000000e+00> : vector<16x256xf32>
    %76 = tpu.matmul %74, %75, %cst_32 {dimension_numbers = #tpu.dot_dimension_numbers<[1], [0], [0], [1], [0, 0, 1, 1], [], []>} : vector<16x256xbf16>, vector<256x256xbf16>, vector<16x256xf32> -> vector<16x256xf32>
    %c3 = arith.constant 3 : index
    %c0_33 = arith.constant 0 : index
    %77 = vector.load %arg8[%c3, %c0_33] : memref<8x256xf32, #tpu.memory_space<vmem>>, vector<1x256xf32>
    %78 = vector.broadcast %77 : vector<1x256xf32> to vector<16x256xf32>
    %79 = arith.addf %76, %78 : vector<16x256xf32>
    %80 = arith.addf %79, %73 : vector<16x256xf32>
    %cst_34 = arith.constant 0.000000e+00 : f32
    %81 = vector.broadcast %cst_34 : f32 to vector<16x256xf32>
    %82 = arith.maximumf %80, %81 : vector<16x256xf32>
    %83 = arith.truncf %82 : vector<16x256xf32> to vector<16x256xbf16>
    %c0_35 = arith.constant 0 : index
    %c0_36 = arith.constant 0 : index
    %84 = vector.load %arg6[%c0_35, %c0_36] : memref<256x128xbf16, #tpu.memory_space<vmem>>, vector<256x128xbf16>
    %cst_37 = arith.constant dense<0.000000e+00> : vector<16x128xf32>
    %85 = tpu.matmul %83, %84, %cst_37 {dimension_numbers = #tpu.dot_dimension_numbers<[1], [0], [0], [1], [0, 0, 1, 1], [], []>} : vector<16x256xbf16>, vector<256x128xbf16>, vector<16x128xf32> -> vector<16x128xf32>
    %c4 = arith.constant 4 : index
    %c0_38 = arith.constant 0 : index
    %86 = vector.load %arg8[%c4, %c0_38] : memref<8x256xf32, #tpu.memory_space<vmem>>, vector<1x128xf32>
    %87 = vector.broadcast %86 : vector<1x128xf32> to vector<16x128xf32>
    %88 = arith.addf %85, %87 : vector<16x128xf32>
    %89 = arith.negf %88 : vector<16x128xf32>
    %90 = math.exp %89 : vector<16x128xf32>
    %cst_39 = arith.constant 1.000000e+00 : f32
    %91 = vector.broadcast %cst_39 : f32 to vector<16x128xf32>
    %92 = arith.addf %91, %90 : vector<16x128xf32>
    %93 = arith.divf %91, %92 : vector<16x128xf32>
    %c0_40 = arith.constant 0 : index
    %c0_41 = arith.constant 0 : index
    %94 = vector.load %arg9[%c0_40, %c0_41] : memref<16x128xf32, #tpu.memory_space<vmem>>, vector<16x128xf32>
    tpu.vector_store %arg9[%c0_40, %c0_41], %93 {strides = array<i32>} : memref<16x128xf32, #tpu.memory_space<vmem>>, vector<16x128xf32>,
    return
  }
  func.func @transform_0(%arg0: i32) -> (i32, i32) {
    %c0_i32 = arith.constant 0 : i32
    %c0_i32_0 = arith.constant 0 : i32
    %c0_i32_1 = arith.constant 0 : i32
    return %c0_i32, %c0_i32_0 : i32, i32
  }
  func.func @transform_1(%arg0: i32) -> (i32, i32) {
    %c0_i32 = arith.constant 0 : i32
    %c0_i32_0 = arith.constant 0 : i32
    %c0_i32_1 = arith.constant 0 : i32
    return %c0_i32, %c0_i32_0 : i32, i32
  }
  func.func @transform_2(%arg0: i32) -> (i32, i32) {
    %c0_i32 = arith.constant 0 : i32
    %c0_i32_0 = arith.constant 0 : i32
    %c0_i32_1 = arith.constant 0 : i32
    return %c0_i32, %c0_i32_0 : i32, i32
  }
  func.func @transform_3(%arg0: i32) -> (i32, i32) {
    %c0_i32 = arith.constant 0 : i32
    %c0_i32_0 = arith.constant 0 : i32
    %c0_i32_1 = arith.constant 0 : i32
    return %c0_i32, %c0_i32_0 : i32, i32
  }
  func.func @transform_4(%arg0: i32) -> (i32, i32) {
    %c0_i32 = arith.constant 0 : i32
    %c0_i32_0 = arith.constant 0 : i32
    %c0_i32_1 = arith.constant 0 : i32
    return %c0_i32, %c0_i32_0 : i32, i32
  }
  func.func @transform_5(%arg0: i32) -> (i32, i32) {
    %c0_i32 = arith.constant 0 : i32
    %c0_i32_0 = arith.constant 0 : i32
    %c0_i32_1 = arith.constant 0 : i32
    return %c0_i32, %c0_i32_0 : i32, i32
  }
  func.func @transform_6(%arg0: i32) -> (i32, i32) {
    %c0_i32 = arith.constant 0 : i32
    %c0_i32_0 = arith.constant 0 : i32
    %c0_i32_1 = arith.constant 0 : i32
    return %c0_i32, %c0_i32_0 : i32, i32
  }
  func.func @transform_7(%arg0: i32) -> (i32, i32) {
    %c0_i32 = arith.constant 0 : i32
    %c0_i32_0 = arith.constant 0 : i32
    %c0_i32_1 = arith.constant 0 : i32
    return %c0_i32, %c0_i32_0 : i32, i32
  }
  func.func @transform_8(%arg0: i32) -> (i32, i32) {
    %c0_i32 = arith.constant 0 : i32
    %c0_i32_0 = arith.constant 0 : i32
    %c0_i32_1 = arith.constant 0 : i32
    return %c0_i32, %c0_i32_0 : i32, i32
  }
}

</mosaic_0001>

<bundles_post_ra>
// kernel: linresbn_forward.1
= control target key start
LH: loop header
LB: loop body
LE: loop exit
PB: predicated region body
PF: predicated region fallthrough
CT: control target
= control target key end

     0   :  { %13 = vsyncpa [#allocation3], 0  ;;  %s2317_s0 = inlined_call_operand.vmem [shape: bf16[16,128], index: 0, kind: input, shape index: {}]   ;;  %s2318_s1 = inlined_call_operand.vmem [shape: bf16[128,256], index: 1, kind: input, shape index: {}]   ;;  %s2319_s2 = inlined_call_operand.vmem [shape: bf16[256,256], index: 2, kind: input, shape index: {}]   ;;  %s2320_s3 = inlined_call_operand.vmem [shape: bf16[256,256], index: 3, kind: input, shape index: {}]   ;;  %s2321_s4 = inlined_call_operand.hbm [shape: bf16[256,256], index: 4, kind: input, shape index: {}]   ;;  %s2322_s5 = inlined_call_operand.hbm [shape: bf16[256,128], index: 5, kind: input, shape index: {}]   ;;  %s2323_s6 = inlined_call_operand.vmem [shape: f32[8,256], index: 6, kind: input, shape index: {}]   ;;  %s2324_s7 = inlined_call_operand.hbm [shape: f32[8,256], index: 7, kind: input, shape index: {}]   ;;  %s2325_s8 = inlined_call_operand.hbm [shape: f32[16,128], index: 8, kind: output, shape index: {}]  }
   0x1   :  { %14 = vsyncpa [#allocation6], 0 }
   0x2   :  { %15 = vsyncpa [#allocation4], 0  ;;  %s1897_s27 = smov [#allocation5]  }
   0x3   :  { %s41_s28 = sshll.u32 %s1897_s27, 4  ;;  %s42_s28 = int_to_ptr.vmem [resolvable:$true] %s41_s28 }
   0x4   :  { %s1819_s29 = scalar_lea.vmem %s42_s28, 2048  ;;  %p1824_p1 = scmp.lt.s32.totalorder %s42_s28, %s42_s28 }
   0x5   :  { %p1820_p0 = scmp.ne.s32.totalorder %s42_s28, %s1819_s29  ;;  %p1825_p2 = scmp.lt.s32.totalorder %s1819_s29, %s1819_s29 }
   0x7   :  { %p1826_p3 = por %p1825_p2, %p1824_p1 }
   0x9   :  { %p1827_p4 = pnand %p1826_p3, %p1820_p0 }
   0xb   :  { %1830 = shalt.err (!%p1827_p4)
}
   0xc   :  { %s1898_s30 = smov 64   ;;  %s1899_s9 = smov 4  }
   0xd   :  { %47 = dma.hbm_to_vmem [thread:$0]  %s2322_s5, 2048, %s42_s28, [#allocation6], %s1898_s30, %s1898_s30, %s1899_s9  }
   0xe   :  { %s1900_s12 = smov [#allocation2]  }
   0xf   :  { %s29_s13 = sshll.u32 %s1900_s12, 4  ;;  %s30_s13 = int_to_ptr.vmem [resolvable:$true] %s29_s13 }
  0x10   :  { %s1839_s14 = scalar_lea.vmem %s30_s13, 4096  ;;  %p1844_p6 = scmp.lt.s32.totalorder %s30_s13, %s30_s13 }
  0x11   :  { %p1840_p5 = scmp.ne.s32.totalorder %s30_s13, %s1839_s14  ;;  %p1845_p7 = scmp.lt.s32.totalorder %s1839_s14, %s1839_s14 }
  0x13   :  { %p1846_p8 = por %p1845_p7, %p1844_p6 }
  0x15   :  { %p1847_p9 = pnand %p1846_p8, %p1840_p5 }
  0x17   :  { %1850 = shalt.err (!%p1847_p9)
}
  0x18   :  { %s1901_s15 = smov 128   ;;  %s1902_s16 = smov 8  }
  0x19   :  { %35 = dma.hbm_to_vmem [thread:$0]  %s2321_s4, 4096, %s30_s13, [#allocation3], %s1901_s15, %s1901_s15, %s1902_s16  }
  0x1a   :  { %s1903_s5 = smov [#allocation7]  }
  0x1b   :  { %s56_s19 = sshll.u32 %s1903_s5, 4  ;;  %s57_s19 = int_to_ptr.vmem [resolvable:$true] %s56_s19 }
  0x1c   :  { %s1859_s20 = scalar_lea.vmem %s57_s19, 256  ;;  %p1864_p11 = scmp.lt.s32.totalorder %s57_s19, %s57_s19 }
  0x1d   :  { %p1860_p10 = scmp.ne.s32.totalorder %s57_s19, %s1859_s20  ;;  %p1865_p12 = scmp.lt.s32.totalorder %s1859_s20, %s1859_s20 }
  0x1f   :  { %p1866_p13 = por %p1865_p12, %p1864_p11 }
  0x21   :  { %p1867_p0 = pnand %p1866_p13, %p1860_p10 }
  0x23   :  { %1870 = shalt.err (!%p1867_p0)
}
  0x24   :  { %59 = dma.hbm_to_vmem [thread:$0]  %s2324_s7, 256, %s57_s19, [#allocation6]  }
  0x25   :  { %1891 = dma.done.wait [#allocation3], 4096  }
  0x26   :  { %1892 = vsyncadd [#allocation3], 4294963200 }
  0x27   :  { %1893 = dma.done.wait [#allocation6], 2304  }
  0x28   :  { %1894 = vsyncadd [#allocation6], 4294964992  ;;  %v1904_v0 = vmov 0   ;;  %v1610_v1 = vld [vmem:[%s2318_s1 + $0x74] ss:$8 sps:$4 sm:$0xff]   ;;  %v1634_v17 = vld [vmem:[%s2317_s0] sm:$0xff]   ;;  %v94_v50 = vlaneseq }
  0x29   :  { %222 = vmatprep.mubr.bf16.mxu0 %v1904_v0  ;;  %v1612_v2 = vld [vmem:[%s2318_s1 + $0x70] ss:$8 sps:$4 sm:$0xff]   ;;  %190 = vmatprep.subr.bf16.mxu0 %v1610_v1  ;;  %v1613_v3 = vld [vmem:[%s2318_s1 + $0x64] ss:$8 sps:$4 sm:$0xff]   ;;  %v1615_v4 = vld [vmem:[%s2318_s1 + $0x60] ss:$8 sps:$4 sm:$0xff]  }
  0x2a   :  { %191 = vmatpush1.bf16.msra.mxu0 %v1612_v2  ;;  %v1616_v5 = vld [vmem:[%s2318_s1 + $0x54] ss:$8 sps:$4 sm:$0xff]   ;;  %v1618_v6 = vld [vmem:[%s2318_s1 + $0x50] ss:$8 sps:$4 sm:$0xff]   ;;  %v1619_v7 = vld [vmem:[%s2318_s1 + $0x44] ss:$8 sps:$4 sm:$0xff]  }
  0x2b   :  { %192 = vmatprep.subr.bf16.mxu0 %v1613_v3  ;;  %v1621_v8 = vld [vmem:[%s2318_s1 + $0x40] ss:$8 sps:$4 sm:$0xff]   ;;  %v1622_v9 = vld [vmem:[%s2318_s1 + $0x34] ss:$8 sps:$4 sm:$0xff]   ;;  %v1624_v10 = vld [vmem:[%s2318_s1 + $0x30] ss:$8 sps:$4 sm:$0xff]  }
  0x2c   :  { %v1625_v11 = vld [vmem:[%s2318_s1 + $0x24] ss:$8 sps:$4 sm:$0xff]   ;;  %v1627_v12 = vld [vmem:[%s2318_s1 + $0x20] ss:$8 sps:$4 sm:$0xff]   ;;  %v1628_v13 = vld [vmem:[%s2318_s1 + $0x14] ss:$8 sps:$4 sm:$0xff]  }
  0x2d   :  { %v1630_v14 = vld [vmem:[%s2318_s1 + $0x10] ss:$8 sps:$4 sm:$0xff]   ;;  %v1631_v15 = vld [vmem:[%s2318_s1 + $0x4] ss:$8 sps:$4 sm:$0xff]   ;;  %v1633_v16 = vld [vmem:[%s2318_s1] ss:$8 sps:$4 sm:$0xff]  }
  0x2e   :  { %193 = vmatpush1.bf16.msra.mxu0 %v1615_v4  ;;  %v1635_v18 = vld [vmem:[%s2319_s2 + $0x74] ss:$8 sps:$4 sm:$0xff]   ;;  %v1637_v19 = vld [vmem:[%s2319_s2 + $0x70] ss:$8 sps:$4 sm:$0xff]   ;;  %v1638_v20 = vld [vmem:[%s2319_s2 + $0x64] ss:$8 sps:$4 sm:$0xff]  }
  0x2f   :  { %194 = vmatprep.subr.bf16.mxu0 %v1616_v5  ;;  %560 = vmatprep.subr.bf16.mxu1 %v1635_v18  ;;  %v1640_v21 = vld [vmem:[%s2319_s2 + $0x60] ss:$8 sps:$4 sm:$0xff]   ;;  %v1641_v22 = vld [vmem:[%s2319_s2 + $0x54] ss:$8 sps:$4 sm:$0xff]   ;;  %v1643_v23 = vld [vmem:[%s2319_s2 + $0x50] ss:$8 sps:$4 sm:$0xff]  }
  0x30   :  { %561 = vmatpush1.bf16.msra.mxu1 %v1637_v19  ;;  %v1644_v24 = vld [vmem:[%s2319_s2 + $0x44] ss:$8 sps:$4 sm:$0xff]   ;;  %v1646_v25 = vld [vmem:[%s2319_s2 + $0x40] ss:$8 sps:$4 sm:$0xff]   ;;  %v1647_v26 = vld [vmem:[%s2319_s2 + $0x34] ss:$8 sps:$4 sm:$0xff]  }
  0x31   :  { %562 = vmatprep.subr.bf16.mxu1 %v1638_v20  ;;  %v1649_v27 = vld [vmem:[%s2319_s2 + $0x30] ss:$8 sps:$4 sm:$0xff]   ;;  %v1650_v28 = vld [vmem:[%s2319_s2 + $0x24] ss:$8 sps:$4 sm:$0xff]   ;;  %v1652_v29 = vld [vmem:[%s2319_s2 + $0x20] ss:$8 sps:$4 sm:$0xff]  }
  0x32   :  { %195 = vmatpush1.bf16.msra.mxu0 %v1618_v6  ;;  %v1653_v30 = vld [vmem:[%s2319_s2 + $0x14] ss:$8 sps:$4 sm:$0xff]   ;;  %v1655_v31 = vld [vmem:[%s2319_s2 + $0x10] ss:$8 sps:$4 sm:$0xff]   ;;  %v1656_v32 = vld [vmem:[%s2319_s2 + $0x4] ss:$8 sps:$4 sm:$0xff]  }
  0x33   :  { %196 = vmatprep.subr.bf16.mxu0 %v1619_v7  ;;  %v1658_v33 = vld [vmem:[%s2319_s2] ss:$8 sps:$4 sm:$0xff]   ;;  %v1659_v34 = vld [vmem:[%s2319_s2 + $0xf4] ss:$8 sps:$4 sm:$0xff]   ;;  %v1661_v35 = vld [vmem:[%s2319_s2 + $0xf0] ss:$8 sps:$4 sm:$0xff]  }
  0x34   :  { %563 = vmatpush1.bf16.msra.mxu1 %v1640_v21  ;;  %v1662_v36 = vld [vmem:[%s2319_s2 + $0xe4] ss:$8 sps:$4 sm:$0xff]   ;;  %v1664_v37 = vld [vmem:[%s2319_s2 + $0xe0] ss:$8 sps:$4 sm:$0xff]   ;;  %v1665_v38 = vld [vmem:[%s2319_s2 + $0xd4] ss:$8 sps:$4 sm:$0xff]  }
  0x35   :  { %564 = vmatprep.subr.bf16.mxu1 %v1641_v22  ;;  %v1667_v39 = vld [vmem:[%s2319_s2 + $0xd0] ss:$8 sps:$4 sm:$0xff]   ;;  %v1668_v40 = vld [vmem:[%s2319_s2 + $0xc4] ss:$8 sps:$4 sm:$0xff]   ;;  %v1670_v41 = vld [vmem:[%s2319_s2 + $0xc0] ss:$8 sps:$4 sm:$0xff]  }
  0x36   :  { %197 = vmatpush1.bf16.msra.mxu0 %v1621_v8  ;;  %v1671_v42 = vld [vmem:[%s2319_s2 + $0xb4] ss:$8 sps:$4 sm:$0xff]   ;;  %v1673_v43 = vld [vmem:[%s2319_s2 + $0xb0] ss:$8 sps:$4 sm:$0xff]   ;;  %v1674_v44 = vld [vmem:[%s2319_s2 + $0xa4] ss:$8 sps:$4 sm:$0xff]  }
  0x37   :  { %198 = vmatprep.subr.bf16.mxu0 %v1622_v9  ;;  %v1676_v45 = vld [vmem:[%s2319_s2 + $0xa0] ss:$8 sps:$4 sm:$0xff]   ;;  %v1677_v46 = vld [vmem:[%s2319_s2 + $0x94] ss:$8 sps:$4 sm:$0xff]   ;;  %v1679_v47 = vld [vmem:[%s2319_s2 + $0x90] ss:$8 sps:$4 sm:$0xff]  }
  0x38   :  { %565 = vmatpush1.bf16.msra.mxu1 %v1643_v23  ;;  %v1680_v48 = vld [vmem:[%s2319_s2 + $0x84] ss:$8 sps:$4 sm:$0xff]   ;;  %v1682_v49 = vld [vmem:[%s2319_s2 + $0x80] ss:$8 sps:$4 sm:$0xff]   ;;  %v2111_v51 = vshrl.u32 %v94_v50, 7 }
  0x39   :  { %566 = vmatprep.subr.bf16.mxu1 %v1644_v24  ;;  %v92_v53 = vld [vmem:[%s2323_s6] ss:$8 sm:$0x3] }
  0x3a   :  { %199 = vmatpush1.bf16.msra.mxu0 %v1624_v10  ;;  %v2114_v52 = vsub.s32 0, %v2111_v51  ;;  %v2120_v54 = vsub.s32 1, %v2111_v51 }
  0x3b   :  { %200 = vmatprep.subr.bf16.mxu0 %v1625_v11 }
  0x3c   :  { %567 = vmatpush1.bf16.msra.mxu1 %v1646_v25  ;;  %v97_v55 = vrot.slane %v92_v53, %v2114_v52  ;;  %v101_v56 = vrot.slane %v92_v53, %v2120_v54 }
  0x3d   :  { %568 = vmatprep.subr.bf16.mxu1 %v1647_v26 }
  0x3e   :  { %201 = vmatpush1.bf16.msra.mxu0 %v1627_v12 }
  0x3f   :  { %202 = vmatprep.subr.bf16.mxu0 %v1628_v13 }
  0x40   :  { %569 = vmatpush1.bf16.msra.mxu1 %v1649_v27 }
  0x41   :  { %570 = vmatprep.subr.bf16.mxu1 %v1650_v28 }
  0x42   :  { %203 = vmatpush1.bf16.msra.mxu0 %v1630_v14 }
  0x43   :  { %204 = vmatprep.subr.bf16.mxu0 %v1631_v15 }
  0x44   :  { %571 = vmatpush1.bf16.msra.mxu1 %v1652_v29 }
  0x45   :  { %572 = vmatprep.subr.bf16.mxu1 %v1653_v30 }
  0x46   :  { %205 = vmatpush1.bf16.msra.mxu0 %v1633_v16 }
  0x48   :  { %573 = vmatpush1.bf16.msra.mxu1 %v1655_v31 }
  0x49   :  { %223 = vmatmul.mubr.bf16.vlgmr.msra.gmra.mxu0 %v1634_v17  ;;  %574 = vmatprep.subr.bf16.mxu1 %v1656_v32 }
  0x4c   :  { %575 = vmatpush1.bf16.msra.mxu1 %v1658_v33 }
  0x4d   :  { %576 = vmatprep.subr.bf16.mxu1 %v1659_v34 }
  0x50   :  { %577 = vmatpush2.bf16.msra.mxu1 %v1661_v35 }
  0x51   :  { %578 = vmatprep.subr.bf16.mxu1 %v1662_v36 }
  0x54   :  { %579 = vmatpush2.bf16.msra.mxu1 %v1664_v37 }
  0x55   :  { %580 = vmatprep.subr.bf16.mxu1 %v1665_v38 }
  0x58   :  { %581 = vmatpush2.bf16.msra.mxu1 %v1667_v39 }
  0x59   :  { %582 = vmatprep.subr.bf16.mxu1 %v1668_v40 }
  0x5c   :  { %583 = vmatpush2.bf16.msra.mxu1 %v1670_v41 }
  0x5d   :  { %584 = vmatprep.subr.bf16.mxu1 %v1671_v42 }
  0x60   :  { %585 = vmatpush2.bf16.msra.mxu1 %v1673_v43 }
  0x61   :  { %586 = vmatprep.subr.bf16.mxu1 %v1674_v44 }
  0x64   :  { %587 = vmatpush2.bf16.msra.mxu1 %v1676_v45 }
  0x65   :  { %588 = vmatprep.subr.bf16.mxu1 %v1677_v46 }
  0x68   :  { %589 = vmatpush2.bf16.msra.mxu1 %v1679_v47 }
  0x69   :  { %590 = vmatprep.subr.bf16.mxu1 %v1680_v48 }
  0x6c   :  { %591 = vmatpush2.bf16.msra.mxu1 %v1682_v49  ;;  %v1905_v49 = vmov 1966171168  }
  0x6d   :  { %v287_v50 = vunpack.c.l.s4 %v1905_v49  ;;  %v1730_v49 = vld [vmem:[%s2320_s3 + $0x84] ss:$8 sps:$4 sm:$0xff]  }
  0x6f   :  { %v288_v53 = vunpack.c.0.s8 %v287_v50  ;;  %v1728_v50 = vld [vmem:[%s2320_s3 + $0x80] ss:$8 sps:$4 sm:$0xff]  }
 0x109   :  { %v224_v57 = vpop.f32.mrf.mxu0 }
 0x10a   :  { %v225_v58 = vadd.f32 %v224_v57, %v97_v55 }
 0x10b   :  { %v226_v59 = vpop.f32.mrf.mxu0 }
 0x10c   :  { %v227_v60 = vadd.f32 %v226_v59, %v101_v56  ;;  %v2124_v62 = vmax.f32 %v225_v58, 0.0 }
 0x10d   :  { %v228_v61 = vpop.f32.mrf.mxu0 }
 0x10e   :  { %v229_v63 = vadd.f32 %v228_v61, %v97_v55  ;;  %v2126_v0 = vmax.f32 %v227_v60, 0.0  ;;  %v253_v4 = vmul.f32 %v2124_v62, %v2124_v62  ;;  %v2148_v60 = vld [vmem:[#allocation7 + $0x5] ss:$8 sm:$0x3] }
 0x10f   :  { %v230_v1 = vpop.f32.mrf.mxu0 }
 0x110   :  { %v2128_v2 = vmax.f32 %v229_v63, 0.0  ;;  %v231_v3 = vadd.f32 %v230_v1, %v101_v56  ;;  %v254_v8 = vmul.f32 %v2126_v0, %v2126_v0  ;;  %v2145_v56 = vsub.s32 %v288_v53, %v2111_v51  ;;  %v1731_v53 = vld [vmem:[#allocation2 + $0x70] ss:$8 sps:$4 sm:$0xff]  }
 0x112   :  { %v237_v5 = vadd.f32 %v2128_v2, %v2124_v62  ;;  %v255_v6 = vmul.f32 %v2128_v2, %v2128_v2  ;;  %v2136_v7 = vmax.f32 %v231_v3, 0.0 }
 0x114   :  { %v238_v9 = vrot.slane %v237_v5, 4  ;;  %v257_v10 = vadd.f32 %v255_v6, %v253_v4  ;;  %v244_v11 = vadd.f32 %v2136_v7, %v2126_v0  ;;  %v256_v12 = vmul.f32 %v2136_v7, %v2136_v7 }
 0x116   :  { %v239_v13 = vadd.f32 %v238_v9, %v237_v5  ;;  %v258_v14 = vrot.slane %v257_v10, 4  ;;  %v245_v15 = vrot.slane %v244_v11, 4  ;;  %v264_v16 = vadd.f32 %v256_v12, %v254_v8  ;;  %v2155_v8 = vld [vmem:[#allocation7 + $0x6] ss:$8 sm:$0x3] }
 0x118   :  { %v240_v17 = vrot.slane %v239_v13, 2  ;;  %v259_v18 = vadd.f32 %v258_v14, %v257_v10  ;;  %v246_v19 = vadd.f32 %v245_v15, %v244_v11  ;;  %v265_v20 = vrot.slane %v264_v16, 4 }
 0x11a   :  { %v241_v21 = vadd.f32 %v240_v17, %v239_v13  ;;  %v260_v22 = vrot.slane %v259_v18, 2  ;;  %v247_v23 = vrot.slane %v246_v19, 2  ;;  %v266_v24 = vadd.f32 %v265_v20, %v264_v16 }
 0x11c   :  { %v242_v25 = vrot.slane %v241_v21, 1  ;;  %v261_v26 = vadd.f32 %v260_v22, %v259_v18  ;;  %v248_v27 = vadd.f32 %v247_v23, %v246_v19  ;;  %v267_v28 = vrot.slane %v266_v24, 2  ;;  %v1686_v22 = vld [vmem:[%s2320_s3 + $0x60] ss:$8 sps:$4 sm:$0xff]   ;;  %v1691_v23 = vld [vmem:[%s2320_s3 + $0x54] ss:$8 sps:$4 sm:$0xff]  }
 0x11e   :  { %v243_v29 = vadd.f32 %v242_v25, %v241_v21  ;;  %v262_v30 = vrot.slane %v261_v26, 1  ;;  %v249_v31 = vrot.slane %v248_v27, 1  ;;  %v268_v32 = vadd.f32 %v267_v28, %v266_v24  ;;  %v1688_v21 = vld [vmem:[%s2320_s3 + $0x64] ss:$8 sps:$4 sm:$0xff]   ;;  %v1689_v24 = vld [vmem:[%s2320_s3 + $0x50] ss:$8 sps:$4 sm:$0xff]  }
 0x11f   :  { %v1694_v25 = vld [vmem:[%s2320_s3 + $0x44] ss:$8 sps:$4 sm:$0xff]   ;;  %v1695_v28 = vld [vmem:[%s2320_s3 + $0x30] ss:$8 sps:$4 sm:$0xff]  }
 0x120   :  { %v251_v33 = vmul.f32 0.0625, %v243_v29  ;;  %v263_v34 = vadd.f32 %v262_v30, %v261_v26  ;;  %v250_v35 = vadd.f32 %v249_v31, %v248_v27  ;;  %v269_v36 = vrot.slane %v268_v32, 1  ;;  %v1692_v26 = vld [vmem:[%s2320_s3 + $0x40] ss:$8 sps:$4 sm:$0xff]   ;;  %v1697_v27 = vld [vmem:[%s2320_s3 + $0x34] ss:$8 sps:$4 sm:$0xff]  }
 0x121   :  { %v1700_v29 = vld [vmem:[%s2320_s3 + $0x24] ss:$8 sps:$4 sm:$0xff]   ;;  %v1698_v30 = vld [vmem:[%s2320_s3 + $0x20] ss:$8 sps:$4 sm:$0xff]   ;;  %v1703_v31 = vld [vmem:[%s2320_s3 + $0x14] ss:$8 sps:$4 sm:$0xff]  }
 0x122   :  { %v271_v37 = vmul.f32 0.0625, %v263_v34  ;;  %v273_v38 = vmul.f32 %v251_v33, %v251_v33  ;;  %v252_v39 = vmul.f32 0.0625, %v250_v35  ;;  %v270_v40 = vadd.f32 %v269_v36, %v268_v32  ;;  %v1701_v32 = vld [vmem:[%s2320_s3 + $0x10] ss:$8 sps:$4 sm:$0xff]   ;;  %v1704_v34 = vld [vmem:[%s2320_s3] ss:$8 sps:$4 sm:$0xff]  }
 0x123   :  { %v1709_v35 = vld [vmem:[%s2320_s3 + $0xf4] ss:$8 sps:$4 sm:$0xff]   ;;  %v1707_v36 = vld [vmem:[%s2320_s3 + $0xf0] ss:$8 sps:$4 sm:$0xff]  }
 0x124   :  { %v275_v41 = vsub.f32 %v271_v37, %v273_v38  ;;  %v272_v42 = vmul.f32 0.0625, %v270_v40  ;;  %v274_v43 = vmul.f32 %v252_v39, %v252_v39  ;;  %v1712_v37 = vld [vmem:[%s2320_s3 + $0xe4] ss:$8 sps:$4 sm:$0xff]   ;;  %v1710_v38 = vld [vmem:[%s2320_s3 + $0xe0] ss:$8 sps:$4 sm:$0xff]  }
 0x125   :  { %v1713_v40 = vld [vmem:[%s2320_s3 + $0xd0] ss:$8 sps:$4 sm:$0xff]  }
 0x126   :  { %v277_v44 = vmax.f32 %v275_v41, 0.0  ;;  %v276_v45 = vsub.f32 %v272_v42, %v274_v43  ;;  %v1718_v41 = vld [vmem:[%s2320_s3 + $0xc4] ss:$8 sps:$4 sm:$0xff]   ;;  %v1716_v42 = vld [vmem:[%s2320_s3 + $0xc0] ss:$8 sps:$4 sm:$0xff]  }
 0x127   :  { %v1719_v43 = vld [vmem:[%s2320_s3 + $0xb0] ss:$8 sps:$4 sm:$0xff]  }
 0x128   :  { %v279_v46 = vadd.f32 1e-05, %v277_v44  ;;  %v278_v47 = vmax.f32 %v276_v45, 0.0  ;;  %v1721_v44 = vld [vmem:[%s2320_s3 + $0xb4] ss:$8 sps:$4 sm:$0xff]  }
 0x129   :  { %v1724_v45 = vld [vmem:[%s2320_s3 + $0xa4] ss:$8 sps:$4 sm:$0xff]  }
 0x12a   :  { %v280_v48 = vadd.f32 1e-05, %v278_v47  ;;  %1795 = vrsqrt.f32 %v279_v46  ;;  %v1722_v46 = vld [vmem:[%s2320_s3 + $0xa0] ss:$8 sps:$4 sm:$0xff]   ;;  %v1727_v47 = vld [vmem:[%s2320_s3 + $0x94] ss:$8 sps:$4 sm:$0xff]  }
 0x12c   :  { %1797 = vrsqrt.f32 %v280_v48  ;;  %v1725_v48 = vld [vmem:[%s2320_s3 + $0x90] ss:$8 sps:$4 sm:$0xff]  }
 0x137   :  { %v1796_v55 = vpop.eup %1795 }
 0x139   :  { %v1798_v57 = vpop.eup %1797 }
 0x13a   :  { %v285_v58 = vcombine.low %v1796_v55, %v1798_v57  ;;  %v1733_v55 = vld [vmem:[#allocation2 + $0x74] ss:$8 sps:$4 sm:$0xff]   ;;  %v1736_v57 = vld [vmem:[#allocation2 + $0x64] ss:$8 sps:$4 sm:$0xff]  }
 0x13b   :  { %1192 = vmatprep.subr.bf16.mxu1 %v1733_v55 }
 0x13c   :  { %v292_v59 = vrot.slane %v285_v58, %v2145_v56  ;;  %v1734_v58 = vld [vmem:[#allocation2 + $0x60] ss:$8 sps:$4 sm:$0xff]  }
 0x13e   :  { %v299_v61 = vrot.slane %v292_v59, %v2145_v56  ;;  %v1739_v59 = vld [vmem:[#allocation2 + $0x54] ss:$8 sps:$4 sm:$0xff]  }
 0x140   :  { %v301_v63 = vmul.f32 %v299_v61, %v2148_v60  ;;  %v1737_v61 = vld [vmem:[#allocation2 + $0x50] ss:$8 sps:$4 sm:$0xff]  }
 0x142   :  { %v306_v1 = vrot.slane %v301_v63, %v2114_v52  ;;  %v310_v3 = vrot.slane %v301_v63, %v2120_v54  ;;  %v1742_v63 = vld [vmem:[#allocation2 + $0x44] ss:$8 sps:$4 sm:$0xff]  }
 0x144   :  { %v317_v4 = vmul.f32 %v306_v1, %v251_v33  ;;  %v318_v5 = vmul.f32 %v310_v3, %v252_v39  ;;  %v314_v11 = vmul.f32 %v310_v3, %v2126_v0  ;;  %v316_v12 = vmul.f32 %v310_v3, %v2136_v7  ;;  %v1706_v33 = vld [vmem:[%s2320_s3 + $0x4] ss:$8 sps:$4 sm:$0xff]   ;;  %v1715_v39 = vld [vmem:[%s2320_s3 + $0xd4] ss:$8 sps:$4 sm:$0xff]  }
 0x145   :  { %v313_v14 = vmul.f32 %v306_v1, %v2124_v62  ;;  %v315_v15 = vmul.f32 %v306_v1, %v2128_v2  ;;  %v1685_v62 = vld [vmem:[%s2320_s3 + $0x74] ss:$8 sps:$4 sm:$0xff]   ;;  %v1683_v2 = vld [vmem:[%s2320_s3 + $0x70] ss:$8 sps:$4 sm:$0xff]   ;;  %v1740_v1 = vld [vmem:[#allocation2 + $0x40] ss:$8 sps:$4 sm:$0xff]  }
 0x146   :  { %v321_v6 = vcombine.low %v317_v4, %v318_v5  ;;  %934 = vmatprep.subr.bf16.mxu0 %v1685_v62  ;;  %v1745_v3 = vld [vmem:[#allocation2 + $0x34] ss:$8 sps:$4 sm:$0xff]   ;;  %v1743_v4 = vld [vmem:[#allocation2 + $0x30] ss:$8 sps:$4 sm:$0xff]   ;;  %v1748_v5 = vld [vmem:[#allocation2 + $0x24] ss:$8 sps:$4 sm:$0xff]  }
 0x147   :  { %935 = vmatpush1.bf16.msra.mxu0 %v1683_v2  ;;  %v1764_v62 = vld [vmem:[#allocation2 + $0xc0] ss:$8 sps:$4 sm:$0xff]   ;;  %s1906_s3 = smov [#allocation8]  }
 0x148   :  { %v328_v51 = vrot.slane %v321_v6, %v2145_v56  ;;  %936 = vmatprep.subr.bf16.mxu0 %v1688_v21  ;;  %v1746_v6 = vld [vmem:[#allocation2 + $0x20] ss:$8 sps:$4 sm:$0xff]   ;;  %s1434_s9 = sshll.u32 %s1906_s3, 4  ;;  %s1435_s9 = int_to_ptr.vmem [resolvable:$true] %s1434_s9 }
 0x149   :  { %v388_v2 = vld [vmem:[#allocation7 + $0x1] ss:$8 sm:$0x3]  ;;  %s1871_s10 = scalar_lea.vmem %s1435_s9, 256  ;;  %p1876_p2 = scmp.lt.s32.totalorder %s1435_s9, %s1435_s9 }
 0x14a   :  { %v335_v9 = vrot.slane %v328_v51, %v2145_v56  ;;  %v1751_v51 = vld [vmem:[#allocation2 + $0x14] ss:$8 sps:$4 sm:$0xff]   ;;  %v393_v21 = vrot.slane %v388_v2, %v2114_v52  ;;  %p1872_p1 = scmp.ne.s32.totalorder %s1435_s9, %s1871_s10  ;;  %p1877_p3 = scmp.lt.s32.totalorder %s1871_s10, %s1871_s10 }
 0x14b   :  { %937 = vmatpush1.bf16.msra.mxu0 %v1686_v22  ;;  %v397_v22 = vrot.slane %v388_v2, %v2120_v54 }
 0x14c   :  { %v337_v10 = vsub.f32 %v2155_v8, %v335_v9  ;;  %938 = vmatprep.subr.bf16.mxu0 %v1691_v23  ;;  %v1749_v9 = vld [vmem:[#allocation2 + $0x10] ss:$8 sps:$4 sm:$0xff]   ;;  %p1878_p4 = por %p1877_p3, %p1876_p2 }
 0x14e   :  { %v346_v13 = vrot.slane %v337_v10, %v2120_v54  ;;  %v342_v16 = vrot.slane %v337_v10, %v2114_v52  ;;  %v1754_v10 = vld [vmem:[#allocation2 + $0x4] ss:$8 sps:$4 sm:$0xff]   ;;  %p1879_p5 = pnand %p1878_p4, %p1872_p1 }
 0x14f   :  { %939 = vmatpush1.bf16.msra.mxu0 %v1689_v24 }
 0x150   :  { %v2165_v17 = vadd.f32 %v346_v13, %v314_v11  ;;  %v2167_v18 = vadd.f32 %v346_v13, %v316_v12  ;;  %v2169_v19 = vadd.f32 %v342_v16, %v313_v14  ;;  %v2171_v20 = vadd.f32 %v342_v16, %v315_v15  ;;  %940 = vmatprep.subr.bf16.mxu0 %v1694_v25  ;;  %v1752_v11 = vld [vmem:[#allocation2] ss:$8 sps:$4 sm:$0xff]   ;;  %v1757_v12 = vld [vmem:[#allocation2 + $0xf4] ss:$8 sps:$4 sm:$0xff]   ;;  %v1755_v13 = vld [vmem:[#allocation2 + $0xf0] ss:$8 sps:$4 sm:$0xff]  }
 0x151   :  { %v1760_v14 = vld [vmem:[#allocation2 + $0xe4] ss:$8 sps:$4 sm:$0xff]   ;;  %v1758_v15 = vld [vmem:[#allocation2 + $0xe0] ss:$8 sps:$4 sm:$0xff]   ;;  %v1763_v16 = vld [vmem:[#allocation2 + $0xd4] ss:$8 sps:$4 sm:$0xff]  }
 0x152   :  { %v354_v0 = vpack.c.bf16 %v2167_v18, %v2165_v17  ;;  %v353_v7 = vpack.c.bf16 %v2171_v20, %v2169_v19 }
 0x153   :  { %941 = vmatpush1.bf16.msra.mxu0 %v1692_v26 }
 0x154   :  { %592 = vmatprep.mubr.bf16.mxu1 %v354_v0  ;;  %942 = vmatprep.subr.bf16.mxu0 %v1697_v27  ;;  %v1761_v0 = vld [vmem:[#allocation2 + $0xd0] ss:$8 sps:$4 sm:$0xff]  }
 0x155   :  { %593 = vmatmul.mubr.bf16.vlgmr.msra.gmra.mxu1 %v353_v7  ;;  %v1766_v7 = vld [vmem:[#allocation2 + $0xc4] ss:$8 sps:$4 sm:$0xff]  }
 0x156   :  { %1193 = vmatpush1.bf16.msra.mxu1 %v1731_v53 }
 0x157   :  { %943 = vmatpush1.bf16.msra.mxu0 %v1695_v28  ;;  %1194 = vmatprep.subr.bf16.mxu1 %v1736_v57 }
 0x158   :  { %944 = vmatprep.subr.bf16.mxu0 %v1700_v29 }
 0x15a   :  { %1195 = vmatpush1.bf16.msra.mxu1 %v1734_v58 }
 0x15b   :  { %945 = vmatpush1.bf16.msra.mxu0 %v1698_v30  ;;  %1196 = vmatprep.subr.bf16.mxu1 %v1739_v59 }
 0x15c   :  { %946 = vmatprep.subr.bf16.mxu0 %v1703_v31 }
 0x15e   :  { %1197 = vmatpush1.bf16.msra.mxu1 %v1737_v61 }
 0x15f   :  { %947 = vmatpush1.bf16.msra.mxu0 %v1701_v32  ;;  %1198 = vmatprep.subr.bf16.mxu1 %v1742_v63 }
 0x160   :  { %948 = vmatprep.subr.bf16.mxu0 %v1706_v33 }
 0x162   :  { %1199 = vmatpush1.bf16.msra.mxu1 %v1740_v1 }
 0x163   :  { %949 = vmatpush1.bf16.msra.mxu0 %v1704_v34  ;;  %1200 = vmatprep.subr.bf16.mxu1 %v1745_v3 }
 0x164   :  { %950 = vmatprep.subr.bf16.mxu0 %v1709_v35 }
 0x166   :  { %1201 = vmatpush1.bf16.msra.mxu1 %v1743_v4 }
 0x167   :  { %951 = vmatpush2.bf16.msra.mxu0 %v1707_v36  ;;  %1202 = vmatprep.subr.bf16.mxu1 %v1748_v5 }
 0x168   :  { %952 = vmatprep.subr.bf16.mxu0 %v1712_v37 }
 0x16a   :  { %1203 = vmatpush1.bf16.msra.mxu1 %v1746_v6 }
 0x16b   :  { %953 = vmatpush2.bf16.msra.mxu0 %v1710_v38  ;;  %1204 = vmatprep.subr.bf16.mxu1 %v1751_v51 }
 0x16c   :  { %954 = vmatprep.subr.bf16.mxu0 %v1715_v39 }
 0x16e   :  { %1205 = vmatpush1.bf16.msra.mxu1 %v1749_v9 }
 0x16f   :  { %955 = vmatpush2.bf16.msra.mxu0 %v1713_v40  ;;  %1206 = vmatprep.subr.bf16.mxu1 %v1754_v10 }
 0x170   :  { %956 = vmatprep.subr.bf16.mxu0 %v1718_v41 }
 0x172   :  { %1207 = vmatpush1.bf16.msra.mxu1 %v1752_v11 }
 0x173   :  { %957 = vmatpush2.bf16.msra.mxu0 %v1716_v42  ;;  %1208 = vmatprep.subr.bf16.mxu1 %v1757_v12 }
 0x174   :  { %958 = vmatprep.subr.bf16.mxu0 %v1721_v44 }
 0x176   :  { %1209 = vmatpush2.bf16.msra.mxu1 %v1755_v13 }
 0x177   :  { %959 = vmatpush2.bf16.msra.mxu0 %v1719_v43  ;;  %1210 = vmatprep.subr.bf16.mxu1 %v1760_v14 }
 0x178   :  { %960 = vmatprep.subr.bf16.mxu0 %v1724_v45 }
 0x17a   :  { %1211 = vmatpush2.bf16.msra.mxu1 %v1758_v15 }
 0x17b   :  { %961 = vmatpush2.bf16.msra.mxu0 %v1722_v46  ;;  %1212 = vmatprep.subr.bf16.mxu1 %v1763_v16 }
 0x17c   :  { %962 = vmatprep.subr.bf16.mxu0 %v1727_v47 }
 0x17e   :  { %1213 = vmatpush2.bf16.msra.mxu1 %v1761_v0 }
 0x17f   :  { %963 = vmatpush2.bf16.msra.mxu0 %v1725_v48  ;;  %1214 = vmatprep.subr.bf16.mxu1 %v1766_v7 }
 0x180   :  { %964 = vmatprep.subr.bf16.mxu0 %v1730_v49 }
 0x182   :  { %1215 = vmatpush2.bf16.msra.mxu1 %v1764_v62 }
 0x183   :  { %965 = vmatpush2.bf16.msra.mxu0 %v1728_v50 }
 0x215   :  { %v594_v23 = vpop.f32.mrf.mxu1 }
 0x216   :  { %v595_v24 = vadd.f32 %v594_v23, %v393_v21 }
 0x217   :  { %v596_v25 = vpop.f32.mrf.mxu1 }
 0x218   :  { %v603_v26 = vadd.f32 %v595_v24, %v2169_v19  ;;  %v597_v27 = vadd.f32 %v596_v25, %v397_v22 }
 0x219   :  { %v598_v28 = vpop.f32.mrf.mxu1 }
 0x21a   :  { %v604_v29 = vadd.f32 %v597_v27, %v2165_v17  ;;  %v599_v30 = vadd.f32 %v598_v28, %v393_v21  ;;  %v2277_v32 = vmax.f32 %v603_v26, 0.0 }
 0x21b   :  { %v600_v31 = vpop.f32.mrf.mxu1 }
 0x21c   :  { %v605_v33 = vadd.f32 %v599_v30, %v2171_v20  ;;  %v601_v34 = vadd.f32 %v600_v31, %v397_v22  ;;  %v2280_v35 = vmax.f32 %v604_v29, 0.0  ;;  %v627_v19 = vmul.f32 %v2277_v32, %v2277_v32 }
 0x21e   :  { %v2282_v36 = vmax.f32 %v605_v33, 0.0  ;;  %v606_v37 = vadd.f32 %v601_v34, %v2167_v18  ;;  %v628_v20 = vmul.f32 %v2280_v35, %v2280_v35 }
 0x220   :  { %v611_v38 = vadd.f32 %v2282_v36, %v2277_v32  ;;  %v629_v17 = vmul.f32 %v2282_v36, %v2282_v36  ;;  %v610_v39 = vmax.f32 %v606_v37, 0.0 }
 0x222   :  { %v612_v40 = vrot.slane %v611_v38, 4  ;;  %v631_v41 = vadd.f32 %v629_v17, %v627_v19  ;;  %v618_v42 = vadd.f32 %v610_v39, %v2280_v35  ;;  %v630_v43 = vmul.f32 %v610_v39, %v610_v39 }
 0x224   :  { %v613_v44 = vadd.f32 %v612_v40, %v611_v38  ;;  %v632_v18 = vrot.slane %v631_v41, 4  ;;  %v619_v45 = vrot.slane %v618_v42, 4  ;;  %v638_v46 = vadd.f32 %v630_v43, %v628_v20 }
 0x226   :  { %v614_v47 = vrot.slane %v613_v44, 2  ;;  %v633_v48 = vadd.f32 %v632_v18, %v631_v41  ;;  %v620_v49 = vadd.f32 %v619_v45, %v618_v42  ;;  %v639_v50 = vrot.slane %v638_v46, 4 }
 0x228   :  { %v615_v53 = vadd.f32 %v614_v47, %v613_v44  ;;  %v634_v55 = vrot.slane %v633_v48, 2  ;;  %v621_v57 = vrot.slane %v620_v49, 2  ;;  %v640_v58 = vadd.f32 %v639_v50, %v638_v46  ;;  %v1778_v50 = vld [vmem:[#allocation2 + $0x84] ss:$8 sps:$4 sm:$0xff]  }
 0x22a   :  { %v616_v59 = vrot.slane %v615_v53, 1  ;;  %v635_v61 = vadd.f32 %v634_v55, %v633_v48  ;;  %v622_v63 = vadd.f32 %v621_v57, %v620_v49  ;;  %v641_v1 = vrot.slane %v640_v58, 2  ;;  %v1776_v49 = vld [vmem:[#allocation2 + $0x80] ss:$8 sps:$4 sm:$0xff]   ;;  %v1780_v55 = vld [vmem:[#allocation5 + $0x38] sm:$0xff]   ;;  %v1781_v57 = vld [vmem:[#allocation5 + $0x70] sm:$0xff]  }
 0x22c   :  { %v617_v3 = vadd.f32 %v616_v59, %v615_v53  ;;  %v636_v4 = vrot.slane %v635_v61, 1  ;;  %v623_v5 = vrot.slane %v622_v63, 1  ;;  %v642_v6 = vadd.f32 %v641_v1, %v640_v58  ;;  %v1779_v53 = vld [vmem:[#allocation5 + $0x78] sm:$0xff]   ;;  %v1782_v58 = vld [vmem:[#allocation5 + $0x30] sm:$0xff]   ;;  %v1783_v59 = vld [vmem:[#allocation5 + $0x68] sm:$0xff]  }
 0x22d   :  { %1578 = vmatprep.subr.bf16.mxu0 %v1779_v53  ;;  %v1786_v1 = vld [vmem:[#allocation5 + $0x20] sm:$0xff]  }
 0x22e   :  { %v625_v51 = vmul.f32 0.0625, %v617_v3  ;;  %v637_v9 = vadd.f32 %v636_v4, %v635_v61  ;;  %v624_v10 = vadd.f32 %v623_v5, %v622_v63  ;;  %v643_v11 = vrot.slane %v642_v6, 1  ;;  %v1784_v61 = vld [vmem:[#allocation5 + $0x28] sm:$0xff]   ;;  %v1785_v63 = vld [vmem:[#allocation5 + $0x60] sm:$0xff]  }
 0x22f   :  { %v762_v3 = vld [vmem:[#allocation7 + $0x2] ss:$8 sm:$0x3] }
 0x230   :  { %v645_v12 = vmul.f32 0.0625, %v637_v9  ;;  %v647_v13 = vmul.f32 %v625_v51, %v625_v51  ;;  %v626_v14 = vmul.f32 0.0625, %v624_v10  ;;  %v644_v15 = vadd.f32 %v643_v11, %v642_v6 }
 0x231   :  { %v771_v4 = vrot.slane %v762_v3, %v2120_v54  ;;  %v767_v5 = vrot.slane %v762_v3, %v2114_v52 }
 0x232   :  { %v649_v16 = vsub.f32 %v645_v12, %v647_v13  ;;  %v646_v0 = vmul.f32 0.0625, %v644_v15  ;;  %v648_v7 = vmul.f32 %v626_v14, %v626_v14 }
 0x234   :  { %v651_v62 = vmax.f32 %v649_v16, 0.0  ;;  %v650_v2 = vsub.f32 %v646_v0, %v648_v7 }
 0x236   :  { %v653_v21 = vadd.f32 1e-05, %v651_v62  ;;  %v652_v22 = vmax.f32 %v650_v2, 0.0 }
 0x238   :  { %v654_v23 = vadd.f32 1e-05, %v652_v22  ;;  %1799 = vrsqrt.f32 %v653_v21 }
 0x23a   :  { %1801 = vrsqrt.f32 %v654_v23 }
 0x245   :  { %v1800_v24 = vpop.eup %1799 }
 0x247   :  { %v1802_v25 = vpop.eup %1801 }
 0x248   :  { %v659_v26 = vcombine.low %v1800_v24, %v1802_v25  ;;  %v1787_v25 = vld [vmem:[#allocation5 + $0x58] sm:$0xff]  }
 0x24a   :  { %v666_v27 = vrot.slane %v659_v26, %v2145_v56  ;;  %v1788_v26 = vld [vmem:[#allocation5 + $0x18] sm:$0xff]  }
 0x24c   :  { %v673_v28 = vrot.slane %v666_v27, %v2145_v56  ;;  %v1789_v27 = vld [vmem:[#allocation5 + $0x50] sm:$0xff]  }
 0x24e   :  { %v675_v29 = vmul.f32 %v673_v28, %v2148_v60  ;;  %v1790_v28 = vld [vmem:[#allocation5 + $0x10] sm:$0xff]  }
 0x250   :  { %v680_v30 = vrot.slane %v675_v29, %v2114_v52  ;;  %v684_v31 = vrot.slane %v675_v29, %v2120_v54  ;;  %v1791_v29 = vld [vmem:[#allocation5 + $0x48] sm:$0xff]  }
 0x252   :  { %v692_v33 = vmul.f32 %v684_v31, %v626_v14  ;;  %v691_v34 = vmul.f32 %v680_v30, %v625_v51  ;;  %v690_v20 = vmul.f32 %v684_v31, %v610_v39  ;;  %v688_v40 = vmul.f32 %v684_v31, %v2280_v35  ;;  %v1772_v35 = vld [vmem:[#allocation2 + $0xa4] ss:$8 sps:$4 sm:$0xff]   ;;  %v1770_v39 = vld [vmem:[#allocation2 + $0xa0] ss:$8 sps:$4 sm:$0xff]  }
 0x253   :  { %v687_v60 = vmul.f32 %v680_v30, %v2277_v32  ;;  %v689_v42 = vmul.f32 %v680_v30, %v2282_v36  ;;  %v1775_v32 = vld [vmem:[#allocation2 + $0x94] ss:$8 sps:$4 sm:$0xff]   ;;  %v1773_v36 = vld [vmem:[#allocation2 + $0x90] ss:$8 sps:$4 sm:$0xff]   ;;  %v1792_v30 = vld [vmem:[#allocation5 + $0x8] sm:$0xff]  }
 0x254   :  { %v695_v37 = vcombine.low %v691_v34, %v692_v33  ;;  %v1793_v31 = vld [vmem:[#allocation5 + $0x40] sm:$0xff]  }
 0x255   :  { %v1794_v33 = vld [vmem:[#allocation5] sm:$0xff]  }
 0x256   :  { %v702_v19 = vrot.slane %v695_v37, %v2145_v56  ;;  %v1020_v34 = vld [vmem:[#allocation7 + $0x3] ss:$8 sm:$0x3] }
 0x257   :  { %v1029_v37 = vrot.slane %v1020_v34, %v2120_v54 }
 0x258   :  { %v709_v38 = vrot.slane %v702_v19, %v2145_v56  ;;  %v1769_v56 = vld [vmem:[#allocation2 + $0xb4] ss:$8 sps:$4 sm:$0xff]   ;;  %v1025_v19 = vrot.slane %v1020_v34, %v2114_v52 }
 0x259   :  { %1216 = vmatprep.subr.bf16.mxu1 %v1769_v56 }
 0x25a   :  { %v711_v17 = vsub.f32 %v2155_v8, %v709_v38  ;;  %v1767_v8 = vld [vmem:[#allocation2 + $0xb0] ss:$8 sps:$4 sm:$0xff]  }
 0x25b   :  { %1217 = vmatpush2.bf16.msra.mxu1 %v1767_v8 }
 0x25c   :  { %v720_v41 = vrot.slane %v711_v17, %v2120_v54  ;;  %v716_v43 = vrot.slane %v711_v17, %v2114_v52  ;;  %1218 = vmatprep.subr.bf16.mxu1 %v1772_v35 }
 0x25e   :  { %v724_v44 = vadd.f32 %v720_v41, %v688_v40  ;;  %v726_v18 = vadd.f32 %v720_v41, %v690_v20  ;;  %v723_v45 = vadd.f32 %v716_v43, %v687_v60  ;;  %v725_v46 = vadd.f32 %v716_v43, %v689_v42 }
 0x25f   :  { %1219 = vmatpush2.bf16.msra.mxu1 %v1770_v39  ;;  %v1277_v39 = vld [vmem:[#allocation7 + $0x4] ss:$0 sm:$0xff] }
 0x260   :  { %v728_v47 = vpack.c.bf16 %v726_v18, %v724_v44  ;;  %v727_v48 = vpack.c.bf16 %v725_v46, %v723_v45  ;;  %1220 = vmatprep.subr.bf16.mxu1 %v1775_v32 }
 0x262   :  { %966 = vmatprep.mubr.bf16.mxu0 %v728_v47 }
 0x263   :  { %967 = vmatmul.mubr.bf16.vlgmr.msra.gmra.mxu0 %v727_v48  ;;  %1221 = vmatpush2.bf16.msra.mxu1 %v1773_v36 }
 0x264   :  { %1222 = vmatprep.subr.bf16.mxu1 %v1778_v50  ;;  %1579 = vmatpush3.bf16.msra.mxu0 %v1780_v55 }
 0x265   :  { %1580 = vmatprep.subr.bf16.mxu0 %v1781_v57 }
 0x267   :  { %1223 = vmatpush2.bf16.msra.mxu1 %v1776_v49 }
 0x268   :  { %1581 = vmatpush3.bf16.msra.mxu0 %v1782_v58 }
 0x269   :  { %1582 = vmatprep.subr.bf16.mxu0 %v1783_v59 }
 0x26c   :  { %1583 = vmatpush3.bf16.msra.mxu0 %v1784_v61 }
 0x26d   :  { %1584 = vmatprep.subr.bf16.mxu0 %v1785_v63 }
 0x270   :  { %1585 = vmatpush3.bf16.msra.mxu0 %v1786_v1 }
 0x271   :  { %1586 = vmatprep.subr.bf16.mxu0 %v1787_v25 }
 0x274   :  { %1587 = vmatpush3.bf16.msra.mxu0 %v1788_v26 }
 0x275   :  { %1588 = vmatprep.subr.bf16.mxu0 %v1789_v27 }
 0x278   :  { %1589 = vmatpush3.bf16.msra.mxu0 %v1790_v28 }
 0x279   :  { %1590 = vmatprep.subr.bf16.mxu0 %v1791_v29 }
 0x27c   :  { %1591 = vmatpush3.bf16.msra.mxu0 %v1792_v30 }
 0x27d   :  { %1592 = vmatprep.subr.bf16.mxu0 %v1793_v31 }
 0x280   :  { %1593 = vmatpush3.bf16.msra.mxu0 %v1794_v33 }
 0x323   :  { %v968_v6 = vpop.f32.mrf.mxu0 }
 0x324   :  { %v969_v10 = vadd.f32 %v968_v6, %v767_v5 }
 0x325   :  { %v970_v51 = vpop.f32.mrf.mxu0 }
 0x326   :  { %v971_v9 = vadd.f32 %v970_v51, %v771_v4  ;;  %v977_v0 = vadd.f32 %v969_v10, %v723_v45 }
 0x327   :  { %v972_v11 = vpop.f32.mrf.mxu0 }
 0x328   :  { %v973_v12 = vadd.f32 %v972_v11, %v767_v5  ;;  %v978_v14 = vadd.f32 %v971_v9, %v724_v44  ;;  %v981_v22 = vmax.f32 %v977_v0, 0.0 }
 0x329   :  { %v974_v13 = vpop.f32.mrf.mxu0 }
 0x32a   :  { %v979_v15 = vadd.f32 %v973_v12, %v725_v46  ;;  %v975_v16 = vadd.f32 %v974_v13, %v771_v4  ;;  %v982_v2 = vmax.f32 %v978_v14, 0.0 }
 0x32c   :  { %v980_v7 = vadd.f32 %v975_v16, %v726_v18  ;;  %v983_v62 = vmax.f32 %v979_v15, 0.0 }
 0x32e   :  { %v984_v21 = vmax.f32 %v980_v7, 0.0  ;;  %v985_v24 = vpack.c.bf16 %v983_v62, %v981_v22 }
 0x330   :  { %v986_v23 = vpack.c.bf16 %v984_v21, %v982_v2 }
 0x332   :  { %1224 = vmatprep.mubr.bf16.mxu1 %v986_v23 }
 0x333   :  { %1225 = vmatmul.mubr.bf16.vlgmr.msra.gmra.mxu1 %v985_v24 }
 0x3f3   :  { %v1226_v38 = vpop.f32.mrf.mxu1 }
 0x3f4   :  { %v1227_v40 = vadd.f32 %v1226_v38, %v1025_v19 }
 0x3f5   :  { %v1228_v17 = vpop.f32.mrf.mxu1 }
 0x3f6   :  { %v1229_v20 = vadd.f32 %v1228_v17, %v1029_v37  ;;  %v1235_v45 = vadd.f32 %v1227_v40, %v981_v22 }
 0x3f7   :  { %v1230_v41 = vpop.f32.mrf.mxu1 }
 0x3f8   :  { %v1231_v60 = vadd.f32 %v1230_v41, %v1025_v19  ;;  %v1236_v43 = vadd.f32 %v1229_v20, %v982_v2  ;;  %v1239_v8 = vmax.f32 %v1235_v45, 0.0 }
 0x3f9   :  { %v1232_v42 = vpop.f32.mrf.mxu1 }
 0x3fa   :  { %v1237_v44 = vadd.f32 %v1231_v60, %v983_v62  ;;  %v1233_v18 = vadd.f32 %v1232_v42, %v1029_v37  ;;  %v1240_v48 = vmax.f32 %v1236_v43, 0.0 }
 0x3fc   :  { %v1238_v46 = vadd.f32 %v1233_v18, %v984_v21  ;;  %v1241_v47 = vmax.f32 %v1237_v44, 0.0 }
 0x3fe   :  { %v1242_v56 = vmax.f32 %v1238_v46, 0.0  ;;  %v1243_v54 = vpack.c.bf16 %v1241_v47, %v1239_v8 }
 0x400   :  { %v1244_v35 = vpack.c.bf16 %v1242_v56, %v1240_v48 }
 0x402   :  { %1406 = vmatprep.mubr.bf16.mxu0 %v1244_v35 }
 0x403   :  { %1407 = vmatmul.mubr.bf16.vlgmr.msra.gmra.mxu0 %v1243_v54 }
 0x4c3   :  { %v1594_v52 = vpop.f32.mrf.mxu0 }
 0x4c5   :  { %v1595_v32 = vpop.f32.mrf.mxu0 }
 0x4c6   :  { %v1596_v36 = vadd.f32 %v1595_v32, %v1594_v52 }
 0x4c7   :  { %v1597_v49 = vpop.f32.mrf.mxu0 }
 0x4c8   :  { %v1409_v50 = vadd.f32 %v1596_v36, %v1277_v39 }
 0x4c9   :  { %v1598_v53 = vpop.f32.mrf.mxu0 }
 0x4ca   :  { %v1576_v55 = vmul.f32 -1.442695, %v1409_v50  ;;  %v1599_v57 = vadd.f32 %v1598_v53, %v1597_v49 }
 0x4cc   :  { %1803 = vpow2.f32 %v1576_v55  ;;  %v1412_v58 = vadd.f32 %v1599_v57, %v1277_v39 }
 0x4ce   :  { %v1577_v59 = vmul.f32 -1.442695, %v1412_v58 }
 0x4d0   :  { %1805 = vpow2.f32 %v1577_v59 }
 0x4d9   :  { %v1804_v61 = vpop.eup %1803 }
 0x4da   :  { %v1421_v63 = vadd.f32 1.0, %v1804_v61 }
 0x4dc   :  { %1807 = vrcp.f32 %v1421_v63 }
 0x4dd   :  { %v1806_v1 = vpop.eup %1805 }
 0x4de   :  { %v1422_v3 = vadd.f32 1.0, %v1806_v1 }
 0x4e0   :  { %1809 = vrcp.f32 %v1422_v3 }
 0x4e9   :  { %v1808_v4 = vpop.eup %1807 }
 0x4ea   :  { %1427 = vst [vmem:[#allocation8] sm:$0xff] %v1808_v4 }
 0x4ed   :  { %v1810_v5 = vpop.eup %1809 }
 0x4ee   :  { %1428 = vst [vmem:[#allocation8 + $0x8] sm:$0xff] %v1810_v5 }
 0x4ef   :  { %1882 = shalt.err (!%p1879_p5)
}
 0x4f0   :  { %1440 = dma.vmem_to_hbm [thread:$0]  %s1435_s9, 256, %s2325_s8, [#allocation4], %s1901_s15, %s1901_s15, %s1902_s16  }
 0x4f1   :  { %1895 = dma.done.wait [#allocation4], 256  }
 0x4f2   :  { %1896 = vsyncadd [#allocation4], 4294967040 }
 0x4f3   :  { %1444 = vsyncpa [#allocation3], 1 }
 0x4f4   :  { %1445 = vsyncpa [#allocation6], 1 }
 0x4f5   :  { %1446 = vsyncpa [#allocation4], 1 }

</bundles_post_ra>
